<compile_context>
chip_gen: v7x
topology: tpu7x:2x2x1
jax: 0.10.0
libtpu: 0.0.40
codegen_flags: <defaults>
</compile_context>

<pallas_src>
import jax
import jax.numpy as jnp
import numpy as np
from jax.experimental import pallas as pl
from jax.experimental.pallas import tpu as pltpu


# ----------------------------------------------------------------------------
# Fused kernel: Gaussian imputation (one matmul for all T) + LSTM recurrence.
#   x_ref      : (N, T*F)      input laid out node-major, lane-dense
#   wnorm_ref  : (N, N)        precomputed normalized imputation weights
#   mcol_ref   : (N, 1)        1.0 = observed node
#   wih_bd_ref : (T*F, T*4H)   block-diagonal kron(I_T, W_ih^T)
#   whh_ref    : (H, 4H)       W_hh^T
#   b_ref      : (1, T*4H)     (b_ih + b_hh) tiled over T
#   o_ref      : (N, T*H)      h_t stacked along lanes
# ----------------------------------------------------------------------------
def _gaussian_lstm_kernel(x_ref, wnorm_ref, mcol_ref, wih_bd_ref, whh_ref,
                          b_ref, o_ref):
    x = x_ref[...]                                    # (N, T*F)
    m = mcol_ref[...]                                 # (N, 1)

    # --- Gaussian imputation for all time steps: one MXU matmul -------------
    xm = x * m                                        # zero unobserved rows
    pred = jnp.dot(wnorm_ref[...], xm,
                   preferred_element_type=jnp.float32)        # (N, T*F)
    ximp = jnp.where(m > 0.5, x, pred)                         # (N, T*F)

    # --- Hoisted input projection for all time steps: one MXU matmul --------
    # (N, T*F) @ (T*F, T*4H) -> (N, T*4H); 128 output lanes at toy sizes.
    xproj = jnp.dot(ximp, wih_bd_ref[...],
                    preferred_element_type=jnp.float32) + b_ref[...]

    whh = whh_ref[...]                                # (H, 4H)
    H = whh.shape[0]
    G = 4 * H
    T = xproj.shape[1] // G
    N = x.shape[0]

    h = jnp.zeros((N, H), jnp.float32)
    c = jnp.zeros((N, H), jnp.float32)
    outs = []
    # Static unroll (T=8, tiny tensors): no per-step grid overhead, full LLO
    # visibility, and lets us emit one lane-dense output store at the end.
    for t in range(T):
        gates = xproj[:, t * G:(t + 1) * G] + jnp.dot(
            h, whh, preferred_element_type=jnp.float32)        # (N, 4H)
        # PyTorch nn.LSTM gate order: i, f, g, o.
        i_g = jax.nn.sigmoid(gates[:, 0 * H:1 * H])
        f_g = jax.nn.sigmoid(gates[:, 1 * H:2 * H])
        g_g = jnp.tanh(gates[:, 2 * H:3 * H])
        o_g = jax.nn.sigmoid(gates[:, 3 * H:4 * H])
        c = f_g * c + i_g * g_g
        h = o_g * jnp.tanh(c)
        outs.append(h)

    # Single lane-dense store of the whole output slab.
    o_ref[...] = jnp.concatenate(outs, axis=1)        # (N, T*H)


def rbf_kernel(data, sigma):
    # One-time init (cached as self.kernel in the PyTorch module).
    sq = jnp.sum((data[:, None, :] - data[None, :, :]) ** 2, axis=-1)
    return jnp.exp(-sq / (2.0 * sigma * sigma))


@jax.jit
def gaussian_lstm_forward(x, mask, data, w_ih, w_hh, b_ih, b_hh):
    T, N, F = x.shape
    H = w_hh.shape[1]                                 # w_hh: (4H, H)

    # ---- one-time parameter prep + layout plumbing (plain JAX) -------------
    kernel = rbf_kernel(data, 3.0)                    # (N, N)
    mask_f = mask.astype(jnp.float32)
    kw = kernel * mask_f[None, :]                     # only observed columns
    den = jnp.sum(kw, axis=1, keepdims=True)          # row-sum (XLU-class op)
    wnorm = kw / jnp.maximum(den, 1e-12)              # (N, N)
    mcol = mask_f.reshape(N, 1)

    # Lane-dense input layout: x[t, n, f] -> x_ntf[n, t*F + f].
    x_ntf = jnp.transpose(x, (1, 0, 2)).reshape(N, T * F)

    wih_t = jnp.transpose(w_ih)                       # (F, 4H)
    whh_t = jnp.transpose(w_hh)                       # (H, 4H)
    # Block-diagonal weight so the input projection for all T is ONE matmul.
    wih_bd = jnp.kron(jnp.eye(T, dtype=x.dtype), wih_t)       # (T*F, T*4H)
    bias = (b_ih + b_hh).reshape(1, 4 * H)
    bias_t = jnp.tile(bias, (1, T))                   # (1, T*4H)

    out_nt = pl.pallas_call(
        _gaussian_lstm_kernel,
        out_shape=jax.ShapeDtypeStruct((N, T * H), jnp.float32),
        grid=(1,),
        in_specs=[
            pl.BlockSpec((N, T * F), lambda i: (0, 0)),
            pl.BlockSpec((N, N), lambda i: (0, 0)),
            pl.BlockSpec((N, 1), lambda i: (0, 0)),
            pl.BlockSpec((T * F, T * 4 * H), lambda i: (0, 0)),
            pl.BlockSpec((H, 4 * H), lambda i: (0, 0)),
            pl.BlockSpec((1, T * 4 * H), lambda i: (0, 0)),
        ],
        out_specs=pl.BlockSpec((N, T * H), lambda i: (0, 0)),
        compiler_params=pltpu.CompilerParams(
            dimension_semantics=("arbitrary",)),
    )(x_ntf, wnorm, mcol, wih_bd, whh_t, bias_t)

    # (N, T*H) -> (T, N, H): free layout plumbing in the wrapper.
    return jnp.transpose(out_nt.reshape(N, T, H), (1, 0, 2))


# ----------------------------------------------------------------------------
# Pure-JAX reference (same math) for a sanity check.
# ----------------------------------------------------------------------------
@jax.jit
def _reference(x, mask, data, w_ih, w_hh, b_ih, b_hh):
    kernel = rbf_kernel(data, 3.0)
    mf = mask.astype(jnp.float32)
    kw = kernel * mf[None, :]
    den = jnp.maximum(jnp.sum(kw, axis=1, keepdims=True), 1e-12)
    pred = jnp.einsum('ij,tjf->tif', kw / den, x * mf[None, :, None])
    xi = jnp.where(mask[None, :, None], x, pred)

    H = w_hh.shape[1]
    N = x.shape[1]

    def step(carry, xt):
        h, c = carry
        gates = xt @ w_ih.T + h @ w_hh.T + b_ih + b_hh
        i = jax.nn.sigmoid(gates[:, 0 * H:1 * H])
        f = jax.nn.sigmoid(gates[:, 1 * H:2 * H])
        g = jnp.tanh(gates[:, 2 * H:3 * H])
        o = jax.nn.sigmoid(gates[:, 3 * H:4 * H])
        c = f * c + i * g
        h = o * jnp.tanh(c)
        return (h, c), h

    init = (jnp.zeros((N, H), jnp.float32), jnp.zeros((N, H), jnp.float32))
    _, hs = jax.lax.scan(step, init, xi)
    return hs


if __name__ == "__main__":
    # Small shapes consistent with the module: seq T=8, nodes N=16,
    # features = hidden = 4 (nn.LSTM(features, features)).
    T, N, F = 8, 16, 4
    H = F

    key = jax.random.PRNGKey(0)
    kx, kd, k1, k2, k3, k4 = jax.random.split(key, 6)

    x = jax.random.normal(kx, (T, N, F), dtype=jnp.float32)
    data = jax.random.normal(kd, (N, 3), dtype=jnp.float32)
    mask = (jnp.arange(N) % 3) != 0          # boolean: True = observed node

    # PyTorch-style U(-1/sqrt(H), 1/sqrt(H)) init.
    stdv = 1.0 / (H ** 0.5)
    w_ih = jax.random.uniform(k1, (4 * H, F), jnp.float32, -stdv, stdv)
    w_hh = jax.random.uniform(k2, (4 * H, H), jnp.float32, -stdv, stdv)
    b_ih = jax.random.uniform(k3, (4 * H,), jnp.float32, -stdv, stdv)
    b_hh = jax.random.uniform(k4, (4 * H,), jnp.float32, -stdv, stdv)

    out = gaussian_lstm_forward(x, mask, data, w_ih, w_hh, b_ih, b_hh)
    out = jax.block_until_ready(out)
    assert out.shape == (T, N, H) and out.dtype == jnp.float32

    # Loose tolerance: MXU default-precision f32 matmuls vs XLA reference.
    ref = jax.block_until_ready(_reference(x, mask, data, w_ih, w_hh, b_ih, b_hh))
    np.testing.assert_allclose(np.asarray(out), np.asarray(ref),
                               rtol=5e-2, atol=5e-2)
    print("KERNEL_OK")
</pallas_src>

<mosaic_0001>
module attributes {stable_mosaic.version = 11 : i64} {
  func.func @_gaussian_lstm_kernel(%arg0: i32, %arg1: memref<16x32xf32, #tpu.memory_space<vmem>>, %arg2: memref<16x16xf32, #tpu.memory_space<vmem>>, %arg3: memref<16x1xf32, #tpu.memory_space<vmem>>, %arg4: memref<32x128xf32, #tpu.memory_space<vmem>>, %arg5: memref<4x16xf32, #tpu.memory_space<vmem>>, %arg6: memref<1x128xf32, #tpu.memory_space<vmem>>, %arg7: memref<16x32xf32, #tpu.memory_space<vmem>>) attributes {dimension_semantics = [#tpu.dimension_semantics<arbitrary>], iteration_bounds = array<i64: 1>, scalar_prefetch = 0 : i64, scratch_operands = 0 : i64, tpu.core_type = #tpu.core_type<tc>, window_params = [{pipeline_mode = #tpu.pipeline_mode<synchronous>, transform_indices = @transform_0, window_bounds = array<i64: 16, 32>}, {pipeline_mode = #tpu.pipeline_mode<synchronous>, transform_indices = @transform_1, window_bounds = array<i64: 16, 16>}, {pipeline_mode = #tpu.pipeline_mode<synchronous>, transform_indices = @transform_2, window_bounds = array<i64: 16, 1>}, {pipeline_mode = #tpu.pipeline_mode<synchronous>, transform_indices = @transform_3, window_bounds = array<i64: 32, 128>}, {pipeline_mode = #tpu.pipeline_mode<synchronous>, transform_indices = @transform_4, window_bounds = array<i64: 4, 16>}, {pipeline_mode = #tpu.pipeline_mode<synchronous>, transform_indices = @transform_5, window_bounds = array<i64: 1, 128>}, {pipeline_mode = #tpu.pipeline_mode<synchronous>, transform_indices = @transform_6, window_bounds = array<i64: 16, 32>}]} {
    %c0 = arith.constant 0 : index
    %c0_0 = arith.constant 0 : index
    %0 = vector.load %arg1[%c0, %c0_0] : memref<16x32xf32, #tpu.memory_space<vmem>>, vector<16x32xf32>
    %c0_1 = arith.constant 0 : index
    %c0_2 = arith.constant 0 : index
    %1 = vector.load %arg3[%c0_1, %c0_2] : memref<16x1xf32, #tpu.memory_space<vmem>>, vector<16x1xf32>
    %2 = vector.broadcast %1 : vector<16x1xf32> to vector<16x32xf32>
    %3 = arith.mulf %0, %2 : vector<16x32xf32>
    %c0_3 = arith.constant 0 : index
    %c0_4 = arith.constant 0 : index
    %4 = vector.load %arg2[%c0_3, %c0_4] : memref<16x16xf32, #tpu.memory_space<vmem>>, vector<16x16xf32>
    %cst = arith.constant dense<0.000000e+00> : vector<16x32xf32>
    %5 = tpu.matmul %4, %3, %cst {dimension_numbers = #tpu.dot_dimension_numbers<[1], [0], [0], [1], [0, 0, 1, 1], [], []>} : vector<16x16xf32>, vector<16x32xf32>, vector<16x32xf32> -> vector<16x32xf32>
    %cst_5 = arith.constant 5.000000e-01 : f32
    %6 = vector.broadcast %cst_5 : f32 to vector<16x1xf32>
    %7 = arith.cmpf ogt, %1, %6 : vector<16x1xf32>
    %8 = vector.shape_cast %7 : vector<16x1xi1> to vector<16x1xi1>
    %9 = vector.broadcast %8 : vector<16x1xi1> to vector<16x32xi1>
    %10 = arith.select %9, %0, %5 : vector<16x32xi1>, vector<16x32xf32>
    %c0_6 = arith.constant 0 : index
    %c0_7 = arith.constant 0 : index
    %11 = vector.load %arg4[%c0_6, %c0_7] : memref<32x128xf32, #tpu.memory_space<vmem>>, vector<32x128xf32>
    %cst_8 = arith.constant dense<0.000000e+00> : vector<16x128xf32>
    %12 = tpu.matmul %10, %11, %cst_8 {dimension_numbers = #tpu.dot_dimension_numbers<[1], [0], [0], [1], [0, 0, 1, 1], [], []>} : vector<16x32xf32>, vector<32x128xf32>, vector<16x128xf32> -> vector<16x128xf32>
    %c0_9 = arith.constant 0 : index
    %c0_10 = arith.constant 0 : index
    %13 = vector.load %arg6[%c0_9, %c0_10] : memref<1x128xf32, #tpu.memory_space<vmem>>, vector<1x128xf32>
    %14 = vector.broadcast %13 : vector<1x128xf32> to vector<16x128xf32>
    %15 = arith.addf %12, %14 : vector<16x128xf32>
    %c0_11 = arith.constant 0 : index
    %c0_12 = arith.constant 0 : index
    %16 = vector.load %arg5[%c0_11, %c0_12] : memref<4x16xf32, #tpu.memory_space<vmem>>, vector<4x16xf32>
    %cst_13 = arith.constant 0.000000e+00 : f32
    %17 = vector.broadcast %cst_13 : f32 to vector<16x4xf32>
    %cst_14 = arith.constant 0.000000e+00 : f32
    %18 = vector.broadcast %cst_14 : f32 to vector<16x4xf32>
    %19 = vector.extract_strided_slice %15 {offsets = [0, 0], sizes = [16, 16], strides = [1, 1]} : vector<16x128xf32> to vector<16x16xf32>
    %cst_15 = arith.constant dense<0.000000e+00> : vector<16x16xf32>
    %20 = tpu.matmul %17, %16, %cst_15 {dimension_numbers = #tpu.dot_dimension_numbers<[1], [0], [0], [1], [0, 0, 1, 1], [], []>} : vector<16x4xf32>, vector<4x16xf32>, vector<16x16xf32> -> vector<16x16xf32>
    %21 = arith.addf %19, %20 : vector<16x16xf32>
    %22 = vector.extract_strided_slice %21 {offsets = [0, 0], sizes = [16, 4], strides = [1, 1]} : vector<16x16xf32> to vector<16x4xf32>
    %23 = arith.negf %22 : vector<16x4xf32>
    %24 = math.exp %23 : vector<16x4xf32>
    %cst_16 = arith.constant 1.000000e+00 : f32
    %25 = vector.broadcast %cst_16 : f32 to vector<16x4xf32>
    %26 = arith.addf %25, %24 : vector<16x4xf32>
    %27 = arith.divf %25, %26 : vector<16x4xf32>
    %28 = vector.extract_strided_slice %21 {offsets = [0, 4], sizes = [16, 4], strides = [1, 1]} : vector<16x16xf32> to vector<16x4xf32>
    %29 = arith.negf %28 : vector<16x4xf32>
    %30 = math.exp %29 : vector<16x4xf32>
    %cst_17 = arith.constant 1.000000e+00 : f32
    %31 = vector.broadcast %cst_17 : f32 to vector<16x4xf32>
    %32 = arith.addf %31, %30 : vector<16x4xf32>
    %33 = arith.divf %31, %32 : vector<16x4xf32>
    %34 = vector.extract_strided_slice %21 {offsets = [0, 8], sizes = [16, 4], strides = [1, 1]} : vector<16x16xf32> to vector<16x4xf32>
    %35 = math.tanh %34 : vector<16x4xf32>
    %36 = vector.extract_strided_slice %21 {offsets = [0, 12], sizes = [16, 4], strides = [1, 1]} : vector<16x16xf32> to vector<16x4xf32>
    %37 = arith.negf %36 : vector<16x4xf32>
    %38 = math.exp %37 : vector<16x4xf32>
    %cst_18 = arith.constant 1.000000e+00 : f32
    %39 = vector.broadcast %cst_18 : f32 to vector<16x4xf32>
    %40 = arith.addf %39, %38 : vector<16x4xf32>
    %41 = arith.divf %39, %40 : vector<16x4xf32>
    %42 = arith.mulf %33, %18 : vector<16x4xf32>
    %43 = arith.mulf %27, %35 : vector<16x4xf32>
    %44 = arith.addf %42, %43 : vector<16x4xf32>
    %45 = math.tanh %44 : vector<16x4xf32>
    %46 = arith.mulf %41, %45 : vector<16x4xf32>
    %47 = vector.extract_strided_slice %15 {offsets = [0, 16], sizes = [16, 16], strides = [1, 1]} : vector<16x128xf32> to vector<16x16xf32>
    %cst_19 = arith.constant dense<0.000000e+00> : vector<16x16xf32>
    %48 = tpu.matmul %46, %16, %cst_19 {dimension_numbers = #tpu.dot_dimension_numbers<[1], [0], [0], [1], [0, 0, 1, 1], [], []>} : vector<16x4xf32>, vector<4x16xf32>, vector<16x16xf32> -> vector<16x16xf32>
    %49 = arith.addf %47, %48 : vector<16x16xf32>
    %50 = vector.extract_strided_slice %49 {offsets = [0, 0], sizes = [16, 4], strides = [1, 1]} : vector<16x16xf32> to vector<16x4xf32>
    %51 = arith.negf %50 : vector<16x4xf32>
    %52 = math.exp %51 : vector<16x4xf32>
    %cst_20 = arith.constant 1.000000e+00 : f32
    %53 = vector.broadcast %cst_20 : f32 to vector<16x4xf32>
    %54 = arith.addf %53, %52 : vector<16x4xf32>
    %55 = arith.divf %53, %54 : vector<16x4xf32>
    %56 = vector.extract_strided_slice %49 {offsets = [0, 4], sizes = [16, 4], strides = [1, 1]} : vector<16x16xf32> to vector<16x4xf32>
    %57 = arith.negf %56 : vector<16x4xf32>
    %58 = math.exp %57 : vector<16x4xf32>
    %cst_21 = arith.constant 1.000000e+00 : f32
    %59 = vector.broadcast %cst_21 : f32 to vector<16x4xf32>
    %60 = arith.addf %59, %58 : vector<16x4xf32>
    %61 = arith.divf %59, %60 : vector<16x4xf32>
    %62 = vector.extract_strided_slice %49 {offsets = [0, 8], sizes = [16, 4], strides = [1, 1]} : vector<16x16xf32> to vector<16x4xf32>
    %63 = math.tanh %62 : vector<16x4xf32>
    %64 = vector.extract_strided_slice %49 {offsets = [0, 12], sizes = [16, 4], strides = [1, 1]} : vector<16x16xf32> to vector<16x4xf32>
    %65 = arith.negf %64 : vector<16x4xf32>
    %66 = math.exp %65 : vector<16x4xf32>
    %cst_22 = arith.constant 1.000000e+00 : f32
    %67 = vector.broadcast %cst_22 : f32 to vector<16x4xf32>
    %68 = arith.addf %67, %66 : vector<16x4xf32>
    %69 = arith.divf %67, %68 : vector<16x4xf32>
    %70 = arith.mulf %61, %44 : vector<16x4xf32>
    %71 = arith.mulf %55, %63 : vector<16x4xf32>
    %72 = arith.addf %70, %71 : vector<16x4xf32>
    %73 = math.tanh %72 : vector<16x4xf32>
    %74 = arith.mulf %69, %73 : vector<16x4xf32>
    %75 = vector.extract_strided_slice %15 {offsets = [0, 32], sizes = [16, 16], strides = [1, 1]} : vector<16x128xf32> to vector<16x16xf32>
    %cst_23 = arith.constant dense<0.000000e+00> : vector<16x16xf32>
    %76 = tpu.matmul %74, %16, %cst_23 {dimension_numbers = #tpu.dot_dimension_numbers<[1], [0], [0], [1], [0, 0, 1, 1], [], []>} : vector<16x4xf32>, vector<4x16xf32>, vector<16x16xf32> -> vector<16x16xf32>
    %77 = arith.addf %75, %76 : vector<16x16xf32>
    %78 = vector.extract_strided_slice %77 {offsets = [0, 0], sizes = [16, 4], strides = [1, 1]} : vector<16x16xf32> to vector<16x4xf32>
    %79 = arith.negf %78 : vector<16x4xf32>
    %80 = math.exp %79 : vector<16x4xf32>
    %cst_24 = arith.constant 1.000000e+00 : f32
    %81 = vector.broadcast %cst_24 : f32 to vector<16x4xf32>
    %82 = arith.addf %81, %80 : vector<16x4xf32>
    %83 = arith.divf %81, %82 : vector<16x4xf32>
    %84 = vector.extract_strided_slice %77 {offsets = [0, 4], sizes = [16, 4], strides = [1, 1]} : vector<16x16xf32> to vector<16x4xf32>
    %85 = arith.negf %84 : vector<16x4xf32>
    %86 = math.exp %85 : vector<16x4xf32>
    %cst_25 = arith.constant 1.000000e+00 : f32
    %87 = vector.broadcast %cst_25 : f32 to vector<16x4xf32>
    %88 = arith.addf %87, %86 : vector<16x4xf32>
    %89 = arith.divf %87, %88 : vector<16x4xf32>
    %90 = vector.extract_strided_slice %77 {offsets = [0, 8], sizes = [16, 4], strides = [1, 1]} : vector<16x16xf32> to vector<16x4xf32>
    %91 = math.tanh %90 : vector<16x4xf32>
    %92 = vector.extract_strided_slice %77 {offsets = [0, 12], sizes = [16, 4], strides = [1, 1]} : vector<16x16xf32> to vector<16x4xf32>
    %93 = arith.negf %92 : vector<16x4xf32>
    %94 = math.exp %93 : vector<16x4xf32>
    %cst_26 = arith.constant 1.000000e+00 : f32
    %95 = vector.broadcast %cst_26 : f32 to vector<16x4xf32>
    %96 = arith.addf %95, %94 : vector<16x4xf32>
    %97 = arith.divf %95, %96 : vector<16x4xf32>
    %98 = arith.mulf %89, %72 : vector<16x4xf32>
    %99 = arith.mulf %83, %91 : vector<16x4xf32>
    %100 = arith.addf %98, %99 : vector<16x4xf32>
    %101 = math.tanh %100 : vector<16x4xf32>
    %102 = arith.mulf %97, %101 : vector<16x4xf32>
    %103 = vector.extract_strided_slice %15 {offsets = [0, 48], sizes = [16, 16], strides = [1, 1]} : vector<16x128xf32> to vector<16x16xf32>
    %cst_27 = arith.constant dense<0.000000e+00> : vector<16x16xf32>
    %104 = tpu.matmul %102, %16, %cst_27 {dimension_numbers = #tpu.dot_dimension_numbers<[1], [0], [0], [1], [0, 0, 1, 1], [], []>} : vector<16x4xf32>, vector<4x16xf32>, vector<16x16xf32> -> vector<16x16xf32>
    %105 = arith.addf %103, %104 : vector<16x16xf32>
    %106 = vector.extract_strided_slice %105 {offsets = [0, 0], sizes = [16, 4], strides = [1, 1]} : vector<16x16xf32> to vector<16x4xf32>
    %107 = arith.negf %106 : vector<16x4xf32>
    %108 = math.exp %107 : vector<16x4xf32>
    %cst_28 = arith.constant 1.000000e+00 : f32
    %109 = vector.broadcast %cst_28 : f32 to vector<16x4xf32>
    %110 = arith.addf %109, %108 : vector<16x4xf32>
    %111 = arith.divf %109, %110 : vector<16x4xf32>
    %112 = vector.extract_strided_slice %105 {offsets = [0, 4], sizes = [16, 4], strides = [1, 1]} : vector<16x16xf32> to vector<16x4xf32>
    %113 = arith.negf %112 : vector<16x4xf32>
    %114 = math.exp %113 : vector<16x4xf32>
    %cst_29 = arith.constant 1.000000e+00 : f32
    %115 = vector.broadcast %cst_29 : f32 to vector<16x4xf32>
    %116 = arith.addf %115, %114 : vector<16x4xf32>
    %117 = arith.divf %115, %116 : vector<16x4xf32>
    %118 = vector.extract_strided_slice %105 {offsets = [0, 8], sizes = [16, 4], strides = [1, 1]} : vector<16x16xf32> to vector<16x4xf32>
    %119 = math.tanh %118 : vector<16x4xf32>
    %120 = vector.extract_strided_slice %105 {offsets = [0, 12], sizes = [16, 4], strides = [1, 1]} : vector<16x16xf32> to vector<16x4xf32>
    %121 = arith.negf %120 : vector<16x4xf32>
    %122 = math.exp %121 : vector<16x4xf32>
    %cst_30 = arith.constant 1.000000e+00 : f32
    %123 = vector.broadcast %cst_30 : f32 to vector<16x4xf32>
    %124 = arith.addf %123, %122 : vector<16x4xf32>
    %125 = arith.divf %123, %124 : vector<16x4xf32>
    %126 = arith.mulf %117, %100 : vector<16x4xf32>
    %127 = arith.mulf %111, %119 : vector<16x4xf32>
    %128 = arith.addf %126, %127 : vector<16x4xf32>
    %129 = math.tanh %128 : vector<16x4xf32>
    %130 = arith.mulf %125, %129 : vector<16x4xf32>
    %131 = vector.extract_strided_slice %15 {offsets = [0, 64], sizes = [16, 16], strides = [1, 1]} : vector<16x128xf32> to vector<16x16xf32>
    %cst_31 = arith.constant dense<0.000000e+00> : vector<16x16xf32>
    %132 = tpu.matmul %130, %16, %cst_31 {dimension_numbers = #tpu.dot_dimension_numbers<[1], [0], [0], [1], [0, 0, 1, 1], [], []>} : vector<16x4xf32>, vector<4x16xf32>, vector<16x16xf32> -> vector<16x16xf32>
    %133 = arith.addf %131, %132 : vector<16x16xf32>
    %134 = vector.extract_strided_slice %133 {offsets = [0, 0], sizes = [16, 4], strides = [1, 1]} : vector<16x16xf32> to vector<16x4xf32>
    %135 = arith.negf %134 : vector<16x4xf32>
    %136 = math.exp %135 : vector<16x4xf32>
    %cst_32 = arith.constant 1.000000e+00 : f32
    %137 = vector.broadcast %cst_32 : f32 to vector<16x4xf32>
    %138 = arith.addf %137, %136 : vector<16x4xf32>
    %139 = arith.divf %137, %138 : vector<16x4xf32>
    %140 = vector.extract_strided_slice %133 {offsets = [0, 4], sizes = [16, 4], strides = [1, 1]} : vector<16x16xf32> to vector<16x4xf32>
    %141 = arith.negf %140 : vector<16x4xf32>
    %142 = math.exp %141 : vector<16x4xf32>
    %cst_33 = arith.constant 1.000000e+00 : f32
    %143 = vector.broadcast %cst_33 : f32 to vector<16x4xf32>
    %144 = arith.addf %143, %142 : vector<16x4xf32>
    %145 = arith.divf %143, %144 : vector<16x4xf32>
    %146 = vector.extract_strided_slice %133 {offsets = [0, 8], sizes = [16, 4], strides = [1, 1]} : vector<16x16xf32> to vector<16x4xf32>
    %147 = math.tanh %146 : vector<16x4xf32>
    %148 = vector.extract_strided_slice %133 {offsets = [0, 12], sizes = [16, 4], strides = [1, 1]} : vector<16x16xf32> to vector<16x4xf32>
    %149 = arith.negf %148 : vector<16x4xf32>
    %150 = math.exp %149 : vector<16x4xf32>
    %cst_34 = arith.constant 1.000000e+00 : f32
    %151 = vector.broadcast %cst_34 : f32 to vector<16x4xf32>
    %152 = arith.addf %151, %150 : vector<16x4xf32>
    %153 = arith.divf %151, %152 : vector<16x4xf32>
    %154 = arith.mulf %145, %128 : vector<16x4xf32>
    %155 = arith.mulf %139, %147 : vector<16x4xf32>
    %156 = arith.addf %154, %155 : vector<16x4xf32>
    %157 = math.tanh %156 : vector<16x4xf32>
    %158 = arith.mulf %153, %157 : vector<16x4xf32>
    %159 = vector.extract_strided_slice %15 {offsets = [0, 80], sizes = [16, 16], strides = [1, 1]} : vector<16x128xf32> to vector<16x16xf32>
    %cst_35 = arith.constant dense<0.000000e+00> : vector<16x16xf32>
    %160 = tpu.matmul %158, %16, %cst_35 {dimension_numbers = #tpu.dot_dimension_numbers<[1], [0], [0], [1], [0, 0, 1, 1], [], []>} : vector<16x4xf32>, vector<4x16xf32>, vector<16x16xf32> -> vector<16x16xf32>
    %161 = arith.addf %159, %160 : vector<16x16xf32>
    %162 = vector.extract_strided_slice %161 {offsets = [0, 0], sizes = [16, 4], strides = [1, 1]} : vector<16x16xf32> to vector<16x4xf32>
    %163 = arith.negf %162 : vector<16x4xf32>
    %164 = math.exp %163 : vector<16x4xf32>
    %cst_36 = arith.constant 1.000000e+00 : f32
    %165 = vector.broadcast %cst_36 : f32 to vector<16x4xf32>
    %166 = arith.addf %165, %164 : vector<16x4xf32>
    %167 = arith.divf %165, %166 : vector<16x4xf32>
    %168 = vector.extract_strided_slice %161 {offsets = [0, 4], sizes = [16, 4], strides = [1, 1]} : vector<16x16xf32> to vector<16x4xf32>
    %169 = arith.negf %168 : vector<16x4xf32>
    %170 = math.exp %169 : vector<16x4xf32>
    %cst_37 = arith.constant 1.000000e+00 : f32
    %171 = vector.broadcast %cst_37 : f32 to vector<16x4xf32>
    %172 = arith.addf %171, %170 : vector<16x4xf32>
    %173 = arith.divf %171, %172 : vector<16x4xf32>
    %174 = vector.extract_strided_slice %161 {offsets = [0, 8], sizes = [16, 4], strides = [1, 1]} : vector<16x16xf32> to vector<16x4xf32>
    %175 = math.tanh %174 : vector<16x4xf32>
    %176 = vector.extract_strided_slice %161 {offsets = [0, 12], sizes = [16, 4], strides = [1, 1]} : vector<16x16xf32> to vector<16x4xf32>
    %177 = arith.negf %176 : vector<16x4xf32>
    %178 = math.exp %177 : vector<16x4xf32>
    %cst_38 = arith.constant 1.000000e+00 : f32
    %179 = vector.broadcast %cst_38 : f32 to vector<16x4xf32>
    %180 = arith.addf %179, %178 : vector<16x4xf32>
    %181 = arith.divf %179, %180 : vector<16x4xf32>
    %182 = arith.mulf %173, %156 : vector<16x4xf32>
    %183 = arith.mulf %167, %175 : vector<16x4xf32>
    %184 = arith.addf %182, %183 : vector<16x4xf32>
    %185 = math.tanh %184 : vector<16x4xf32>
    %186 = arith.mulf %181, %185 : vector<16x4xf32>
    %187 = vector.extract_strided_slice %15 {offsets = [0, 96], sizes = [16, 16], strides = [1, 1]} : vector<16x128xf32> to vector<16x16xf32>
    %cst_39 = arith.constant dense<0.000000e+00> : vector<16x16xf32>
    %188 = tpu.matmul %186, %16, %cst_39 {dimension_numbers = #tpu.dot_dimension_numbers<[1], [0], [0], [1], [0, 0, 1, 1], [], []>} : vector<16x4xf32>, vector<4x16xf32>, vector<16x16xf32> -> vector<16x16xf32>
    %189 = arith.addf %187, %188 : vector<16x16xf32>
    %190 = vector.extract_strided_slice %189 {offsets = [0, 0], sizes = [16, 4], strides = [1, 1]} : vector<16x16xf32> to vector<16x4xf32>
    %191 = arith.negf %190 : vector<16x4xf32>
    %192 = math.exp %191 : vector<16x4xf32>
    %cst_40 = arith.constant 1.000000e+00 : f32
    %193 = vector.broadcast %cst_40 : f32 to vector<16x4xf32>
    %194 = arith.addf %193, %192 : vector<16x4xf32>
    %195 = arith.divf %193, %194 : vector<16x4xf32>
    %196 = vector.extract_strided_slice %189 {offsets = [0, 4], sizes = [16, 4], strides = [1, 1]} : vector<16x16xf32> to vector<16x4xf32>
    %197 = arith.negf %196 : vector<16x4xf32>
    %198 = math.exp %197 : vector<16x4xf32>
    %cst_41 = arith.constant 1.000000e+00 : f32
    %199 = vector.broadcast %cst_41 : f32 to vector<16x4xf32>
    %200 = arith.addf %199, %198 : vector<16x4xf32>
    %201 = arith.divf %199, %200 : vector<16x4xf32>
    %202 = vector.extract_strided_slice %189 {offsets = [0, 8], sizes = [16, 4], strides = [1, 1]} : vector<16x16xf32> to vector<16x4xf32>
    %203 = math.tanh %202 : vector<16x4xf32>
    %204 = vector.extract_strided_slice %189 {offsets = [0, 12], sizes = [16, 4], strides = [1, 1]} : vector<16x16xf32> to vector<16x4xf32>
    %205 = arith.negf %204 : vector<16x4xf32>
    %206 = math.exp %205 : vector<16x4xf32>
    %cst_42 = arith.constant 1.000000e+00 : f32
    %207 = vector.broadcast %cst_42 : f32 to vector<16x4xf32>
    %208 = arith.addf %207, %206 : vector<16x4xf32>
    %209 = arith.divf %207, %208 : vector<16x4xf32>
    %210 = arith.mulf %201, %184 : vector<16x4xf32>
    %211 = arith.mulf %195, %203 : vector<16x4xf32>
    %212 = arith.addf %210, %211 : vector<16x4xf32>
    %213 = math.tanh %212 : vector<16x4xf32>
    %214 = arith.mulf %209, %213 : vector<16x4xf32>
    %215 = vector.extract_strided_slice %15 {offsets = [0, 112], sizes = [16, 16], strides = [1, 1]} : vector<16x128xf32> to vector<16x16xf32>
    %cst_43 = arith.constant dense<0.000000e+00> : vector<16x16xf32>
    %216 = tpu.matmul %214, %16, %cst_43 {dimension_numbers = #tpu.dot_dimension_numbers<[1], [0], [0], [1], [0, 0, 1, 1], [], []>} : vector<16x4xf32>, vector<4x16xf32>, vector<16x16xf32> -> vector<16x16xf32>
    %217 = arith.addf %215, %216 : vector<16x16xf32>
    %218 = vector.extract_strided_slice %217 {offsets = [0, 0], sizes = [16, 4], strides = [1, 1]} : vector<16x16xf32> to vector<16x4xf32>
    %219 = arith.negf %218 : vector<16x4xf32>
    %220 = math.exp %219 : vector<16x4xf32>
    %cst_44 = arith.constant 1.000000e+00 : f32
    %221 = vector.broadcast %cst_44 : f32 to vector<16x4xf32>
    %222 = arith.addf %221, %220 : vector<16x4xf32>
    %223 = arith.divf %221, %222 : vector<16x4xf32>
    %224 = vector.extract_strided_slice %217 {offsets = [0, 4], sizes = [16, 4], strides = [1, 1]} : vector<16x16xf32> to vector<16x4xf32>
    %225 = arith.negf %224 : vector<16x4xf32>
    %226 = math.exp %225 : vector<16x4xf32>
    %cst_45 = arith.constant 1.000000e+00 : f32
    %227 = vector.broadcast %cst_45 : f32 to vector<16x4xf32>
    %228 = arith.addf %227, %226 : vector<16x4xf32>
    %229 = arith.divf %227, %228 : vector<16x4xf32>
    %230 = vector.extract_strided_slice %217 {offsets = [0, 8], sizes = [16, 4], strides = [1, 1]} : vector<16x16xf32> to vector<16x4xf32>
    %231 = math.tanh %230 : vector<16x4xf32>
    %232 = vector.extract_strided_slice %217 {offsets = [0, 12], sizes = [16, 4], strides = [1, 1]} : vector<16x16xf32> to vector<16x4xf32>
    %233 = arith.negf %232 : vector<16x4xf32>
    %234 = math.exp %233 : vector<16x4xf32>
    %cst_46 = arith.constant 1.000000e+00 : f32
    %235 = vector.broadcast %cst_46 : f32 to vector<16x4xf32>
    %236 = arith.addf %235, %234 : vector<16x4xf32>
    %237 = arith.divf %235, %236 : vector<16x4xf32>
    %238 = arith.mulf %229, %212 : vector<16x4xf32>
    %239 = arith.mulf %223, %231 : vector<16x4xf32>
    %240 = arith.addf %238, %239 : vector<16x4xf32>
    %241 = math.tanh %240 : vector<16x4xf32>
    %242 = arith.mulf %237, %241 : vector<16x4xf32>
    %243 = tpu.concatenate %46, %74, %102, %130, %158, %186, %214, %242 in 1 : vector<16x4xf32>, vector<16x4xf32>, vector<16x4xf32>, vector<16x4xf32>, vector<16x4xf32>, vector<16x4xf32>, vector<16x4xf32>, vector<16x4xf32> -> vector<16x32xf32>
    %c0_47 = arith.constant 0 : index
    %c0_48 = arith.constant 0 : index
    %244 = vector.load %arg7[%c0_47, %c0_48] : memref<16x32xf32, #tpu.memory_space<vmem>>, vector<16x32xf32>
    tpu.vector_store %arg7[%c0_47, %c0_48], %243 {strides = array<i32>} : memref<16x32xf32, #tpu.memory_space<vmem>>, vector<16x32xf32>,
    return
  }
  func.func @transform_0(%arg0: i32) -> (i32, i32) {
    %c0_i32 = arith.constant 0 : i32
    %c0_i32_0 = arith.constant 0 : i32
    %c0_i32_1 = arith.constant 0 : i32
    return %c0_i32, %c0_i32_0 : i32, i32
  }
  func.func @transform_1(%arg0: i32) -> (i32, i32) {
    %c0_i32 = arith.constant 0 : i32
    %c0_i32_0 = arith.constant 0 : i32
    %c0_i32_1 = arith.constant 0 : i32
    return %c0_i32, %c0_i32_0 : i32, i32
  }
  func.func @transform_2(%arg0: i32) -> (i32, i32) {
    %c0_i32 = arith.constant 0 : i32
    %c0_i32_0 = arith.constant 0 : i32
    %c0_i32_1 = arith.constant 0 : i32
    return %c0_i32, %c0_i32_0 : i32, i32
  }
  func.func @transform_3(%arg0: i32) -> (i32, i32) {
    %c0_i32 = arith.constant 0 : i32
    %c0_i32_0 = arith.constant 0 : i32
    %c0_i32_1 = arith.constant 0 : i32
    return %c0_i32, %c0_i32_0 : i32, i32
  }
  func.func @transform_4(%arg0: i32) -> (i32, i32) {
    %c0_i32 = arith.constant 0 : i32
    %c0_i32_0 = arith.constant 0 : i32
    %c0_i32_1 = arith.constant 0 : i32
    return %c0_i32, %c0_i32_0 : i32, i32
  }
  func.func @transform_5(%arg0: i32) -> (i32, i32) {
    %c0_i32 = arith.constant 0 : i32
    %c0_i32_0 = arith.constant 0 : i32
    %c0_i32_1 = arith.constant 0 : i32
    return %c0_i32, %c0_i32_0 : i32, i32
  }
  func.func @transform_6(%arg0: i32) -> (i32, i32) {
    %c0_i32 = arith.constant 0 : i32
    %c0_i32_0 = arith.constant 0 : i32
    %c0_i32_1 = arith.constant 0 : i32
    return %c0_i32, %c0_i32_0 : i32, i32
  }
}

</mosaic_0001>

<bundles_post_ra>
// kernel: gaussian_lstm_forward.1
= control target key start
LH: loop header
LB: loop body
LE: loop exit
PB: predicated region body
PF: predicated region fallthrough
CT: control target
= control target key end

     0   :  { %v1792_v0 = vmov 0   ;;  %vm41_vm0 = vcmask 130048   ;;  %vm235_vm3 = vcmask 1043456   ;;  %v1793_v21 = vmov 0.0   ;;  %s1796_s17 = smov 8   ;;  %s1797_s18 = smov 116   ;;  %s2102_s2 = inlined_call_operand.vmem [shape: f32[16,1], index: 2, kind: input, shape index: {}]   ;;  %s2103_s1 = inlined_call_operand.vmem [shape: f32[16,16], index: 1, kind: input, shape index: {}]   ;;  %s2104_s3 = inlined_call_operand.vmem [shape: f32[32,128], index: 3, kind: input, shape index: {}]   ;;  %s2105_s0 = inlined_call_operand.vmem [shape: f32[16,32], index: 0, kind: input, shape index: {}]   ;;  %s2106_s4 = inlined_call_operand.vmem [shape: f32[4,16], index: 4, kind: input, shape index: {}]   ;;  %s2107_s5 = inlined_call_operand.vmem [shape: f32[1,128], index: 5, kind: input, shape index: {}]   ;;  %s2108_s6 = inlined_call_operand.vmem [shape: f32[16,32], index: 6, kind: output, shape index: {}]  }
   0x1   :  { %1662 = vset.pattern.permute.xlu0 %v1792_v0  ;;  %v25_v1 = vld [vmem:[%s2102_s2] sm:$0xff]  ;;  %1663 = vset.pattern.permute.xlu1 %v1792_v0  ;;  %v26_v2 = vld [vmem:[%s2102_s2 + $0x8] sm:$0xff]  ;;  %v139_v17 = vld [vmem:[%s2104_s3 + $0x10] sm:$0xff]  ;;  %vm148_vm4 = vcmask 261120   ;;  %vm231_vm7 = vcmask 31744   ;;  %s1798_s19 = smov 16  }
   0x2   :  { %29 = vperm.xlu0 %1662, %v25_v1   ;;  %v39_v3 = vld [vmem:[%s2103_s1] sm:$0xff]  ;;  %vm123_vm1 = vcmp.gt.f32.partialorder %v25_v1, 0.5  ;;  %vm124_vm2 = vcmp.gt.f32.partialorder %v26_v2, 0.5  ;;  %v138_v7 = vld [vmem:[%s2104_s3 + $0x8] sm:$0xff]  ;;  %v140_v18 = vld [vmem:[%s2104_s3 + $0x18] sm:$0xff]  ;;  %s1799_s20 = smov 100  }
   0x3   :  { %1573 = vmatprep.mubr.msk.f32.mxu0 %vm41_vm0, %v39_v3  ;;  %v125_v4 = vsel %vm123_vm1, 1, %v1792_v0  ;;  %v126_v5 = vsel %vm124_vm2, 1, %v1792_v0  ;;  %v137_v6 = vld [vmem:[%s2104_s3] sm:$0xff]  ;;  %v24_v11 = vld [vmem:[%s2105_s0 + $0x8] sm:$0xff]  ;;  %v1635_v19 = vpack.c.bf16 %v140_v18, %v139_v17  ;;  %s1800_s21 = smov 32   ;;  %s1801_s22 = smov 84  }
   0x4   :  { %128 = vperm.xlu1 %1663, %v125_v4   ;;  %v1631_v8 = vpack.c.bf16 %v138_v7, %v137_v6  ;;  %v23_v10 = vld [vmem:[%s2105_s0] sm:$0xff]  ;;  %v40_v16 = vld [vmem:[%s2103_s1 + $0x8] sm:$0xff]  ;;  %s1802_s23 = smov 48   ;;  %s1803_s24 = smov 68   ;;  %vm1469_vm8 = vcmask 64512   ;;  %vm1472_vm9 = vcmask 97280  }
   0x5   :  { %v1885_v20 = vld [vmem:[%s2106_s4] sm:$0xf]  ;;  %s1794_s4 = smov 120   ;;  %s1804_s25 = smov 64   ;;  %vm1477_vm10 = vcmask 162816   ;;  %vm1480_vm11 = vcmask 195584  }
   0x6   :  { %34 = vperm.xlu0 %1662, %v26_v2   ;;  %1632 = vmatprep.subr.bf16.mxu1 %v1631_v8  ;;  %v1494_v30 = vld [vmem:[%s2107_s5] ss:$0 sm:$0xff]  ;;  %s1795_s5 = smov 4   ;;  %s1805_s26 = smov 52   ;;  %vm1483_vm12 = vcmask 228352  }
   0x7   :  { %1634 = vmatpush3.bf16.msra.mxu1 %v1631_v8  ;;  %s1806_s27 = smov 80   ;;  %s1807_s28 = smov 36  }
   0x8   :  { %131 = vperm.xlu1 %1663, %v126_v5   ;;  %1636 = vmatprep.subr.bf16.mxu1 %v1635_v19  ;;  %s1808_s29 = smov 96   ;;  %s1809_s30 = smov 20  }
   0x9   :  { %s1810_s2 = smov 112   ;;  %s1811_s7 = smov 104  }
   0xa   :  { %s1812_s8 = smov 92   ;;  %s1813_s9 = smov 56  }
   0xb   :  { %1638 = vmatpush3.bf16.msra.mxu1 %v1635_v19  ;;  %s1814_s10 = smov 44  }
   0xc   :  { %1597 = vmatprep.subr.msk.mxu1 %vm235_vm3, %v1885_v20 }
  0x81   :  { %v30_v9 = vpop.permute.xlu0 %29 }
  0x82   :  { %v37_v13 = vmul.f32 %v30_v9, %v23_v10 }
  0x83   :  { %v129_v22 = vpop.permute.xlu1 %128 }
  0x84   :  { %vm133_vm5 = vcmp.eq.s32.totalorder %v129_v22, 1 }
  0x85   :  { %v35_v12 = vpop.permute.xlu0 %34 }
  0x86   :  { %v38_v14 = vmul.f32 %v35_v12, %v24_v11 }
  0x87   :  { %v132_v23 = vpop.permute.xlu1 %131 }
  0x88   :  { %v1627_v15 = vpack.c.bf16 %v38_v14, %v37_v13  ;;  %vm134_vm6 = vcmp.eq.s32.totalorder %v132_v23, 1 }
  0x8a   :  { %1628 = vmatprep.subr.bf16.mxu0 %v1627_v15 }
  0x8b   :  { %1630 = vmatpush3.bf16.msra.mxu0 %v1627_v15 }
  0x8c   :  { %1587 = vmatprep.subr.msk.mxu0 %vm235_vm3, %v1885_v20 }
  0x8e   :  { %1574 = vmatmul.mubr.msk.f32.vlgmr.msra.gmra.mrb[0].mxu0 %vm41_vm0, %v40_v16 }
  0x8f   :  { %1588 = vmatpush3.msk.msra.mxu0 %vm235_vm3, %v1885_v20  ;;  %1589 = vmatprep.mubr.f32.mxu0 %v1793_v21 }
  0x90   :  { %1592 = vmatprep.subr.msk.mxu0 %vm235_vm3, %v1885_v20 }
  0x92   :  { %1590 = vmatmul.mubr.f32.vlgmr.msra.gmra.mrb[2].mxu0 %v1793_v21 }
  0x93   :  { %1593 = vmatpush3.msk.msra.mxu0 %vm235_vm3, %v1885_v20 }
  0x94   :  { %1602 = vmatprep.subr.msk.mxu0 %vm235_vm3, %v1885_v20 }
 0x161   :  { %v1575_v24 = vpop.f32.mrb[0].mxu0 }
 0x162   :  { %v114_v25 = vpop.f32.mrb[1].mxu0  ;;  %v136_v27 = vsel %vm134_vm6, %v24_v11, %v1575_v24 }
 0x163   :  { %v135_v26 = vsel %vm133_vm5, %v23_v10, %v114_v25 }
 0x164   :  { %1584 = vmatprep.mubr.msk.f32.mxu1 %vm148_vm4, %v135_v26 }
 0x165   :  { %1585 = vmatmul.mubr.msk.f32.vlgmr.msra.gmra.mrb[0].mxu1 %vm148_vm4, %v136_v27  ;;  %v1591_v28 = vpop.f32.mrb[2].mxu0 }
 0x166   :  { %1598 = vmatpush3.msk.msra.mxu1 %vm235_vm3, %v1885_v20  ;;  %v305_v29 = vpop.f32.mrb[3].mxu0 }
 0x167   :  { %1607 = vmatprep.subr.msk.mxu1 %vm235_vm3, %v1885_v20 }
 0x238   :  { %v1586_v31 = vpop.f32.mrb[0].mxu1 }
 0x239   :  { %v1908_v32 = vadd.f32 %v1586_v31, %v1494_v30  ;;  %v221_v33 = vpop.f32.mrb[1].mxu1 }
 0x23a   :  { %v1910_v34 = vadd.f32 %v1494_v30, %v221_v33 }
 0x23b   :  { %v315_v35 = vadd.f32 %v1591_v28, %v1908_v32 }
 0x23c   :  { %v314_v36 = vadd.f32 %v305_v29, %v1910_v34 }
 0x23d   :  { %1664 = vtanh.f32 %v315_v35  ;;  %v1499_v39 = vmul.f32 -1.442695, %v315_v35 }
 0x23e   :  { %1666 = vtanh.f32 %v314_v36  ;;  %v1498_v40 = vmul.f32 -1.442695, %v314_v36 }
 0x23f   :  { %1668 = vpow2.f32 %v1499_v39 }
 0x240   :  { %1670 = vpow2.f32 %v1498_v40 }
 0x247   :  { %v1665_v37 = vpop.eup %1664 }
 0x248   :  { %v1667_v38 = vpop.eup %1666  ;;  %336 = vrot.lane.b32.xlu1 %v1665_v37, %s1794_s4 }
 0x249   :  { %334 = vrot.lane.b32.xlu0 %v1667_v38, %s1794_s4  ;;  %v1669_v41 = vpop.eup %1668 }
 0x24a   :  { %v1671_v42 = vpop.eup %1670  ;;  %v323_v43 = vadd.f32 1.0, %v1669_v41 }
 0x24b   :  { %v322_v44 = vadd.f32 1.0, %v1671_v42 }
 0x24c   :  { %1672 = vrcp.f32 %v323_v43 }
 0x24d   :  { %1674 = vrcp.f32 %v322_v44 }
 0x256   :  { %v1673_v45 = vpop.eup %1672 }
 0x257   :  { %v1675_v47 = vpop.eup %1674  ;;  %v331_v51 = vmul.f32 0.0, %v1673_v45 }
 0x258   :  { %v330_v53 = vmul.f32 0.0, %v1675_v47 }
 0x2ba   :  { %v337_v46 = vpop.permute.xlu1 %336 }
 0x2bb   :  { %v341_v48 = vmul.f32 %v1673_v45, %v337_v46  ;;  %v335_v49 = vpop.permute.xlu0 %334 }
 0x2bc   :  { %v340_v50 = vmul.f32 %v1675_v47, %v335_v49 }
 0x2bd   :  { %346 = vrot.lane.b32.xlu1 %v341_v48, %s1795_s5 }
 0x2be   :  { %344 = vrot.lane.b32.xlu0 %v340_v50, %s1795_s5 }
 0x32f   :  { %v347_v52 = vpop.permute.xlu1 %346 }
 0x330   :  { %v351_v54 = vadd.f32 %v347_v52, %v331_v51  ;;  %v345_v55 = vpop.permute.xlu0 %344 }
 0x331   :  { %v350_v56 = vadd.f32 %v345_v55, %v330_v53 }
 0x332   :  { %1676 = vtanh.f32 %v351_v54 }
 0x333   :  { %1678 = vtanh.f32 %v350_v56 }
 0x33c   :  { %v1677_v57 = vpop.eup %1676 }
 0x33d   :  { %v1679_v58 = vpop.eup %1678  ;;  %358 = vrot.lane.b32.xlu1 %v1677_v57, %s1796_s17 }
 0x33e   :  { %356 = vrot.lane.b32.xlu0 %v1679_v58, %s1796_s17 }
 0x3af   :  { %v359_v59 = vpop.permute.xlu1 %358 }
 0x3b0   :  { %v363_v60 = vmul.f32 %v1673_v45, %v359_v59  ;;  %v357_v61 = vpop.permute.xlu0 %356 }
 0x3b1   :  { %v362_v62 = vmul.f32 %v1675_v47, %v357_v61 }
 0x3b2   :  { %368 = vrot.lane.b32.xlu1 %v363_v60, %s1797_s18 }
 0x3b3   :  { %366 = vrot.lane.b32.xlu0 %v362_v62, %s1797_s18 }
 0x424   :  { %v1922_v0 = vpop.permute.xlu1 %368 }
 0x425   :  { %v1920_v63 = vpop.permute.xlu0 %366 }
 0x426   :  { %1594 = vmatprep.mubr.msk.f32.mxu0 %vm231_vm7, %v1920_v63 }
 0x427   :  { %1595 = vmatmul.mubr.msk.f32.vlgmr.msra.gmra.mrb[4].mxu0 %vm231_vm7, %v1922_v0 }
 0x428   :  { %1603 = vmatpush3.msk.msra.mxu0 %vm235_vm3, %v1885_v20 }
 0x429   :  { %1612 = vmatprep.subr.msk.mxu0 %vm235_vm3, %v1885_v20 }
 0x4fa   :  { %v1596_v1 = vpop.f32.mrb[4].mxu0 }
 0x4fb   :  { %453 = vrot.lane.b32.xlu1 %v1596_v1, %s1798_s19  ;;  %v440_v2 = vpop.f32.mrb[5].mxu0 }
 0x4fc   :  { %451 = vrot.lane.b32.xlu0 %v440_v2, %s1798_s19 }
 0x56d   :  { %v454_v3 = vpop.permute.xlu1 %453 }
 0x56e   :  { %v458_v4 = vadd.f32 %v454_v3, %v1908_v32  ;;  %v452_v5 = vpop.permute.xlu0 %451 }
 0x56f   :  { %v457_v6 = vadd.f32 %v452_v5, %v1910_v34 }
 0x570   :  { %1680 = vtanh.f32 %v458_v4  ;;  %v1504_v9 = vmul.f32 -1.442695, %v458_v4 }
 0x571   :  { %1682 = vtanh.f32 %v457_v6  ;;  %v1503_v10 = vmul.f32 -1.442695, %v457_v6 }
 0x572   :  { %1684 = vpow2.f32 %v1504_v9 }
 0x573   :  { %1686 = vpow2.f32 %v1503_v10 }
 0x57a   :  { %v1681_v7 = vpop.eup %1680 }
 0x57b   :  { %v1683_v8 = vpop.eup %1682  ;;  %487 = vrot.lane.b32.xlu1 %v1681_v7, %s1794_s4 }
 0x57c   :  { %485 = vrot.lane.b32.xlu0 %v1683_v8, %s1794_s4  ;;  %v1685_v11 = vpop.eup %1684 }
 0x57d   :  { %v1687_v12 = vpop.eup %1686  ;;  %v466_v13 = vadd.f32 1.0, %v1685_v11 }
 0x57e   :  { %v465_v14 = vadd.f32 1.0, %v1687_v12 }
 0x57f   :  { %477 = vrot.lane.b32.xlu1 %v351_v54, %s1798_s19  ;;  %1688 = vrcp.f32 %v466_v13 }
 0x580   :  { %475 = vrot.lane.b32.xlu0 %v350_v56, %s1798_s19  ;;  %1690 = vrcp.f32 %v465_v14 }
 0x589   :  { %v1689_v15 = vpop.eup %1688 }
 0x58a   :  { %v1691_v17 = vpop.eup %1690 }
 0x5ed   :  { %v488_v16 = vpop.permute.xlu1 %487 }
 0x5ee   :  { %v492_v18 = vmul.f32 %v1689_v15, %v488_v16  ;;  %v486_v19 = vpop.permute.xlu0 %485 }
 0x5ef   :  { %v491_v21 = vmul.f32 %v1691_v17, %v486_v19 }
 0x5f0   :  { %497 = vrot.lane.b32.xlu1 %v492_v18, %s1795_s5 }
 0x5f1   :  { %495 = vrot.lane.b32.xlu0 %v491_v21, %s1795_s5  ;;  %v478_v22 = vpop.permute.xlu1 %477 }
 0x5f2   :  { %v476_v23 = vpop.permute.xlu0 %475  ;;  %v482_v24 = vmul.f32 %v1689_v15, %v478_v22 }
 0x5f3   :  { %v481_v25 = vmul.f32 %v1691_v17, %v476_v23 }
 0x662   :  { %v498_v26 = vpop.permute.xlu1 %497 }
 0x663   :  { %v502_v27 = vadd.f32 %v498_v26, %v482_v24  ;;  %v496_v28 = vpop.permute.xlu0 %495 }
 0x664   :  { %v501_v29 = vadd.f32 %v496_v28, %v481_v25 }
 0x665   :  { %1692 = vtanh.f32 %v502_v27 }
 0x666   :  { %1694 = vtanh.f32 %v501_v29 }
 0x66f   :  { %v1693_v30 = vpop.eup %1692 }
 0x670   :  { %v1695_v31 = vpop.eup %1694  ;;  %509 = vrot.lane.b32.xlu1 %v1693_v30, %s1796_s17 }
 0x671   :  { %507 = vrot.lane.b32.xlu0 %v1695_v31, %s1796_s17 }
 0x6e2   :  { %v510_v33 = vpop.permute.xlu1 %509 }
 0x6e3   :  { %v1944_v35 = vmul.f32 %v1689_v15, %v510_v33  ;;  %v508_v36 = vpop.permute.xlu0 %507 }
 0x6e4   :  { %v1946_v37 = vmul.f32 %v1691_v17, %v508_v36 }
 0x6e5   :  { %519 = vrot.lane.b32.xlu1 %v1944_v35, %s1799_s20 }
 0x6e6   :  { %517 = vrot.lane.b32.xlu0 %v1946_v37, %s1799_s20 }
 0x757   :  { %v520_v39 = vpop.permute.xlu1 %519 }
 0x758   :  { %v518_v38 = vpop.permute.xlu0 %517 }
 0x759   :  { %1599 = vmatprep.mubr.msk.f32.mxu1 %vm231_vm7, %v518_v38 }
 0x75a   :  { %1600 = vmatmul.mubr.msk.f32.vlgmr.msra.gmra.mrb[2].mxu1 %vm231_vm7, %v520_v39 }
 0x75b   :  { %1608 = vmatpush3.msk.msra.mxu1 %vm235_vm3, %v1885_v20 }
 0x75c   :  { %1617 = vmatprep.subr.msk.mxu1 %vm235_vm3, %v1885_v20 }
 0x82d   :  { %v1601_v40 = vpop.f32.mrb[2].mxu1 }
 0x82e   :  { %604 = vrot.lane.b32.xlu1 %v1601_v40, %s1800_s21  ;;  %v591_v41 = vpop.f32.mrb[3].mxu1 }
 0x82f   :  { %602 = vrot.lane.b32.xlu0 %v591_v41, %s1800_s21 }
 0x8a0   :  { %v605_v42 = vpop.permute.xlu1 %604 }
 0x8a1   :  { %v609_v43 = vadd.f32 %v605_v42, %v1908_v32  ;;  %v603_v44 = vpop.permute.xlu0 %602 }
 0x8a2   :  { %v608_v45 = vadd.f32 %v603_v44, %v1910_v34 }
 0x8a3   :  { %1696 = vtanh.f32 %v609_v43  ;;  %v1509_v48 = vmul.f32 -1.442695, %v609_v43 }
 0x8a4   :  { %1698 = vtanh.f32 %v608_v45  ;;  %v1508_v49 = vmul.f32 -1.442695, %v608_v45 }
 0x8a5   :  { %1700 = vpow2.f32 %v1509_v48 }
 0x8a6   :  { %1702 = vpow2.f32 %v1508_v49 }
 0x8ad   :  { %v1697_v46 = vpop.eup %1696 }
 0x8ae   :  { %v1699_v47 = vpop.eup %1698  ;;  %638 = vrot.lane.b32.xlu1 %v1697_v46, %s1794_s4 }
 0x8af   :  { %636 = vrot.lane.b32.xlu0 %v1699_v47, %s1794_s4  ;;  %v1701_v50 = vpop.eup %1700 }
 0x8b0   :  { %v1703_v51 = vpop.eup %1702  ;;  %v617_v52 = vadd.f32 1.0, %v1701_v50 }
 0x8b1   :  { %v616_v53 = vadd.f32 1.0, %v1703_v51 }
 0x8b2   :  { %628 = vrot.lane.b32.xlu1 %v502_v27, %s1798_s19  ;;  %1704 = vrcp.f32 %v617_v52 }
 0x8b3   :  { %626 = vrot.lane.b32.xlu0 %v501_v29, %s1798_s19  ;;  %1706 = vrcp.f32 %v616_v53 }
 0x8bc   :  { %v1705_v54 = vpop.eup %1704 }
 0x8bd   :  { %v1707_v56 = vpop.eup %1706 }
 0x920   :  { %v639_v55 = vpop.permute.xlu1 %638 }
 0x921   :  { %v643_v57 = vmul.f32 %v1705_v54, %v639_v55  ;;  %v637_v58 = vpop.permute.xlu0 %636 }
 0x922   :  { %v642_v59 = vmul.f32 %v1707_v56, %v637_v58 }
 0x923   :  { %648 = vrot.lane.b32.xlu1 %v643_v57, %s1795_s5 }
 0x924   :  { %646 = vrot.lane.b32.xlu0 %v642_v59, %s1795_s5  ;;  %v629_v60 = vpop.permute.xlu1 %628 }
 0x925   :  { %v627_v61 = vpop.permute.xlu0 %626  ;;  %v633_v62 = vmul.f32 %v1705_v54, %v629_v60 }
 0x926   :  { %v632_v1 = vmul.f32 %v1707_v56, %v627_v61 }
 0x995   :  { %v649_v2 = vpop.permute.xlu1 %648 }
 0x996   :  { %v653_v3 = vadd.f32 %v649_v2, %v633_v62  ;;  %v647_v4 = vpop.permute.xlu0 %646 }
 0x997   :  { %v652_v5 = vadd.f32 %v647_v4, %v632_v1 }
 0x998   :  { %1708 = vtanh.f32 %v653_v3 }
 0x999   :  { %1710 = vtanh.f32 %v652_v5 }
 0x9a2   :  { %v1709_v6 = vpop.eup %1708 }
 0x9a3   :  { %v1711_v7 = vpop.eup %1710  ;;  %660 = vrot.lane.b32.xlu1 %v1709_v6, %s1796_s17 }
 0x9a4   :  { %658 = vrot.lane.b32.xlu0 %v1711_v7, %s1796_s17 }
 0xa15   :  { %v661_v8 = vpop.permute.xlu1 %660 }
 0xa16   :  { %v1968_v9 = vmul.f32 %v1705_v54, %v661_v8  ;;  %v659_v10 = vpop.permute.xlu0 %658 }
 0xa17   :  { %v1970_v11 = vmul.f32 %v1707_v56, %v659_v10 }
 0xa18   :  { %670 = vrot.lane.b32.xlu1 %v1968_v9, %s1801_s22 }
 0xa19   :  { %668 = vrot.lane.b32.xlu0 %v1970_v11, %s1801_s22 }
 0xa8a   :  { %v671_v13 = vpop.permute.xlu1 %670 }
 0xa8b   :  { %v669_v12 = vpop.permute.xlu0 %668 }
 0xa8c   :  { %1604 = vmatprep.mubr.msk.f32.mxu0 %vm231_vm7, %v669_v12 }
 0xa8d   :  { %1605 = vmatmul.mubr.msk.f32.vlgmr.msra.gmra.mrb[6].mxu0 %vm231_vm7, %v671_v13 }
 0xa8e   :  { %1613 = vmatpush3.msk.msra.mxu0 %vm235_vm3, %v1885_v20 }
 0xa8f   :  { %1622 = vmatprep.subr.msk.mxu0 %vm235_vm3, %v1885_v20 }
 0xb60   :  { %v1606_v14 = vpop.f32.mrb[6].mxu0 }
 0xb61   :  { %755 = vrot.lane.b32.xlu1 %v1606_v14, %s1802_s23  ;;  %v742_v15 = vpop.f32.mrb[7].mxu0 }
 0xb62   :  { %753 = vrot.lane.b32.xlu0 %v742_v15, %s1802_s23 }
 0xbd3   :  { %v756_v16 = vpop.permute.xlu1 %755 }
 0xbd4   :  { %v760_v17 = vadd.f32 %v756_v16, %v1908_v32  ;;  %v754_v18 = vpop.permute.xlu0 %753 }
 0xbd5   :  { %v759_v19 = vadd.f32 %v754_v18, %v1910_v34 }
 0xbd6   :  { %1712 = vtanh.f32 %v760_v17  ;;  %v1514_v23 = vmul.f32 -1.442695, %v760_v17 }
 0xbd7   :  { %1714 = vtanh.f32 %v759_v19  ;;  %v1513_v24 = vmul.f32 -1.442695, %v759_v19 }
 0xbd8   :  { %1716 = vpow2.f32 %v1514_v23 }
 0xbd9   :  { %1718 = vpow2.f32 %v1513_v24 }
 0xbe0   :  { %v1713_v21 = vpop.eup %1712 }
 0xbe1   :  { %v1715_v22 = vpop.eup %1714  ;;  %789 = vrot.lane.b32.xlu1 %v1713_v21, %s1794_s4 }
 0xbe2   :  { %787 = vrot.lane.b32.xlu0 %v1715_v22, %s1794_s4  ;;  %v1717_v25 = vpop.eup %1716 }
 0xbe3   :  { %v1719_v26 = vpop.eup %1718  ;;  %v768_v27 = vadd.f32 1.0, %v1717_v25 }
 0xbe4   :  { %v767_v28 = vadd.f32 1.0, %v1719_v26 }
 0xbe5   :  { %779 = vrot.lane.b32.xlu1 %v653_v3, %s1798_s19  ;;  %1720 = vrcp.f32 %v768_v27 }
 0xbe6   :  { %777 = vrot.lane.b32.xlu0 %v652_v5, %s1798_s19  ;;  %1722 = vrcp.f32 %v767_v28 }
 0xbef   :  { %v1721_v29 = vpop.eup %1720 }
 0xbf0   :  { %v1723_v31 = vpop.eup %1722 }
 0xc53   :  { %v790_v30 = vpop.permute.xlu1 %789 }
 0xc54   :  { %v794_v33 = vmul.f32 %v1721_v29, %v790_v30  ;;  %v788_v36 = vpop.permute.xlu0 %787 }
 0xc55   :  { %v793_v38 = vmul.f32 %v1723_v31, %v788_v36 }
 0xc56   :  { %799 = vrot.lane.b32.xlu1 %v794_v33, %s1795_s5 }
 0xc57   :  { %797 = vrot.lane.b32.xlu0 %v793_v38, %s1795_s5  ;;  %v780_v39 = vpop.permute.xlu1 %779 }
 0xc58   :  { %v778_v40 = vpop.permute.xlu0 %777  ;;  %v784_v41 = vmul.f32 %v1721_v29, %v780_v39 }
 0xc59   :  { %v783_v42 = vmul.f32 %v1723_v31, %v778_v40 }
 0xcc8   :  { %v800_v43 = vpop.permute.xlu1 %799 }
 0xcc9   :  { %v804_v44 = vadd.f32 %v800_v43, %v784_v41  ;;  %v798_v45 = vpop.permute.xlu0 %797 }
 0xcca   :  { %v803_v46 = vadd.f32 %v798_v45, %v783_v42 }
 0xccb   :  { %1724 = vtanh.f32 %v804_v44 }
 0xccc   :  { %1726 = vtanh.f32 %v803_v46 }
 0xcd5   :  { %v1725_v47 = vpop.eup %1724 }
 0xcd6   :  { %v1727_v48 = vpop.eup %1726  ;;  %811 = vrot.lane.b32.xlu1 %v1725_v47, %s1796_s17 }
 0xcd7   :  { %809 = vrot.lane.b32.xlu0 %v1727_v48, %s1796_s17 }
 0xd48   :  { %v812_v49 = vpop.permute.xlu1 %811 }
 0xd49   :  { %v1990_v50 = vmul.f32 %v1721_v29, %v812_v49  ;;  %v810_v51 = vpop.permute.xlu0 %809 }
 0xd4a   :  { %v1992_v52 = vmul.f32 %v1723_v31, %v810_v51 }
 0xd4b   :  { %821 = vrot.lane.b32.xlu1 %v1990_v50, %s1803_s24 }
 0xd4c   :  { %819 = vrot.lane.b32.xlu0 %v1992_v52, %s1803_s24 }
 0xdbd   :  { %v822_v54 = vpop.permute.xlu1 %821 }
 0xdbe   :  { %v820_v53 = vpop.permute.xlu0 %819 }
 0xdbf   :  { %1609 = vmatprep.mubr.msk.f32.mxu1 %vm231_vm7, %v820_v53 }
 0xdc0   :  { %1610 = vmatmul.mubr.msk.f32.vlgmr.msra.gmra.mrb[4].mxu1 %vm231_vm7, %v822_v54 }
 0xdc1   :  { %1618 = vmatpush3.msk.msra.mxu1 %vm235_vm3, %v1885_v20 }
 0xe93   :  { %v1611_v55 = vpop.f32.mrb[4].mxu1 }
 0xe94   :  { %906 = vrot.lane.b32.xlu1 %v1611_v55, %s1804_s25  ;;  %v893_v56 = vpop.f32.mrb[5].mxu1 }
 0xe95   :  { %904 = vrot.lane.b32.xlu0 %v893_v56, %s1804_s25 }
 0xf06   :  { %v907_v57 = vpop.permute.xlu1 %906 }
 0xf07   :  { %v911_v58 = vadd.f32 %v907_v57, %v1908_v32  ;;  %v905_v59 = vpop.permute.xlu0 %904 }
 0xf08   :  { %v910_v60 = vadd.f32 %v905_v59, %v1910_v34 }
 0xf09   :  { %1728 = vtanh.f32 %v911_v58  ;;  %v1519_v1 = vmul.f32 -1.442695, %v911_v58 }
 0xf0a   :  { %1730 = vtanh.f32 %v910_v60  ;;  %v1518_v2 = vmul.f32 -1.442695, %v910_v60 }
 0xf0b   :  { %1732 = vpow2.f32 %v1519_v1 }
 0xf0c   :  { %1734 = vpow2.f32 %v1518_v2 }
 0xf13   :  { %v1729_v61 = vpop.eup %1728 }
 0xf14   :  { %v1731_v62 = vpop.eup %1730  ;;  %940 = vrot.lane.b32.xlu1 %v1729_v61, %s1794_s4 }
 0xf15   :  { %938 = vrot.lane.b32.xlu0 %v1731_v62, %s1794_s4  ;;  %v1733_v3 = vpop.eup %1732 }
 0xf16   :  { %v1735_v4 = vpop.eup %1734  ;;  %v919_v5 = vadd.f32 1.0, %v1733_v3 }
 0xf17   :  { %v918_v6 = vadd.f32 1.0, %v1735_v4 }
 0xf18   :  { %930 = vrot.lane.b32.xlu1 %v804_v44, %s1798_s19  ;;  %1736 = vrcp.f32 %v919_v5 }
 0xf19   :  { %928 = vrot.lane.b32.xlu0 %v803_v46, %s1798_s19  ;;  %1738 = vrcp.f32 %v918_v6 }
 0xf22   :  { %v1737_v7 = vpop.eup %1736 }
 0xf23   :  { %v1739_v10 = vpop.eup %1738 }
 0xf86   :  { %v941_v8 = vpop.permute.xlu1 %940 }
 0xf87   :  { %v945_v12 = vmul.f32 %v1737_v7, %v941_v8  ;;  %v939_v13 = vpop.permute.xlu0 %938 }
 0xf88   :  { %v944_v14 = vmul.f32 %v1739_v10, %v939_v13 }
 0xf89   :  { %950 = vrot.lane.b32.xlu1 %v945_v12, %s1795_s5 }
 0xf8a   :  { %948 = vrot.lane.b32.xlu0 %v944_v14, %s1795_s5  ;;  %v931_v15 = vpop.permute.xlu1 %930 }
 0xf8b   :  { %v929_v16 = vpop.permute.xlu0 %928  ;;  %v935_v17 = vmul.f32 %v1737_v7, %v931_v15 }
 0xf8c   :  { %v934_v18 = vmul.f32 %v1739_v10, %v929_v16 }
 0xffb   :  { %v951_v19 = vpop.permute.xlu1 %950 }
 0xffc   :  { %v955_v21 = vadd.f32 %v951_v19, %v935_v17  ;;  %v949_v22 = vpop.permute.xlu0 %948 }
 0xffd   :  { %v954_v23 = vadd.f32 %v949_v22, %v934_v18 }
 0xffe   :  { %1740 = vtanh.f32 %v955_v21 }
 0xfff   :  { %1742 = vtanh.f32 %v954_v23 }
0x1008   :  { %v1741_v24 = vpop.eup %1740 }
0x1009   :  { %v1743_v25 = vpop.eup %1742  ;;  %962 = vrot.lane.b32.xlu1 %v1741_v24, %s1796_s17 }
0x100a   :  { %960 = vrot.lane.b32.xlu0 %v1743_v25, %s1796_s17 }
0x107b   :  { %v963_v26 = vpop.permute.xlu1 %962 }
0x107c   :  { %v2012_v27 = vmul.f32 %v1737_v7, %v963_v26  ;;  %v961_v28 = vpop.permute.xlu0 %960 }
0x107d   :  { %v2014_v29 = vmul.f32 %v1739_v10, %v961_v28 }
0x107e   :  { %972 = vrot.lane.b32.xlu1 %v2012_v27, %s1805_s26 }
0x107f   :  { %970 = vrot.lane.b32.xlu0 %v2014_v29, %s1805_s26 }
0x10f0   :  { %v973_v31 = vpop.permute.xlu1 %972 }
0x10f1   :  { %v971_v30 = vpop.permute.xlu0 %970 }
0x10f2   :  { %1614 = vmatprep.mubr.msk.f32.mxu0 %vm231_vm7, %v971_v30 }
0x10f3   :  { %1615 = vmatmul.mubr.msk.f32.vlgmr.msra.gmra.mrb[8].mxu0 %vm231_vm7, %v973_v31 }
0x10f4   :  { %1623 = vmatpush3.msk.msra.mxu0 %vm235_vm3, %v1885_v20 }
0x11c6   :  { %v1616_v33 = vpop.f32.mrb[8].mxu0 }
0x11c7   :  { %1057 = vrot.lane.b32.xlu1 %v1616_v33, %s1806_s27  ;;  %v1044_v36 = vpop.f32.mrb[9].mxu0 }
0x11c8   :  { %1055 = vrot.lane.b32.xlu0 %v1044_v36, %s1806_s27 }
0x1239   :  { %v1058_v38 = vpop.permute.xlu1 %1057 }
0x123a   :  { %v1062_v39 = vadd.f32 %v1058_v38, %v1908_v32  ;;  %v1056_v40 = vpop.permute.xlu0 %1055 }
0x123b   :  { %v1061_v41 = vadd.f32 %v1056_v40, %v1910_v34 }
0x123c   :  { %1744 = vtanh.f32 %v1062_v39  ;;  %v1524_v20 = vmul.f32 -1.442695, %v1062_v39 }
0x123d   :  { %1746 = vtanh.f32 %v1061_v41  ;;  %v1523_v44 = vmul.f32 -1.442695, %v1061_v41 }
0x123e   :  { %1748 = vpow2.f32 %v1524_v20 }
0x123f   :  { %1750 = vpow2.f32 %v1523_v44 }
0x1246   :  { %v1745_v42 = vpop.eup %1744 }
0x1247   :  { %v1747_v43 = vpop.eup %1746  ;;  %1091 = vrot.lane.b32.xlu1 %v1745_v42, %s1794_s4 }
0x1248   :  { %1089 = vrot.lane.b32.xlu0 %v1747_v43, %s1794_s4  ;;  %v1749_v45 = vpop.eup %1748 }
0x1249   :  { %v1751_v46 = vpop.eup %1750  ;;  %v1070_v47 = vadd.f32 1.0, %v1749_v45 }
0x124a   :  { %v1069_v48 = vadd.f32 1.0, %v1751_v46 }
0x124b   :  { %1081 = vrot.lane.b32.xlu1 %v955_v21, %s1798_s19  ;;  %1752 = vrcp.f32 %v1070_v47 }
0x124c   :  { %1079 = vrot.lane.b32.xlu0 %v954_v23, %s1798_s19  ;;  %1754 = vrcp.f32 %v1069_v48 }
0x1255   :  { %v1753_v49 = vpop.eup %1752 }
0x1256   :  { %v1755_v53 = vpop.eup %1754 }
0x12b9   :  { %v1092_v51 = vpop.permute.xlu1 %1091 }
0x12ba   :  { %v1096_v54 = vmul.f32 %v1753_v49, %v1092_v51  ;;  %v1090_v55 = vpop.permute.xlu0 %1089 }
0x12bb   :  { %v1095_v56 = vmul.f32 %v1755_v53, %v1090_v55 }
0x12bc   :  { %1101 = vrot.lane.b32.xlu1 %v1096_v54, %s1795_s5 }
0x12bd   :  { %1099 = vrot.lane.b32.xlu0 %v1095_v56, %s1795_s5  ;;  %v1082_v57 = vpop.permute.xlu1 %1081 }
0x12be   :  { %v1080_v58 = vpop.permute.xlu0 %1079  ;;  %v1086_v59 = vmul.f32 %v1753_v49, %v1082_v57 }
0x12bf   :  { %v1085_v60 = vmul.f32 %v1755_v53, %v1080_v58 }
0x132e   :  { %v1102_v61 = vpop.permute.xlu1 %1101 }
0x132f   :  { %v1106_v62 = vadd.f32 %v1102_v61, %v1086_v59  ;;  %v1100_v1 = vpop.permute.xlu0 %1099 }
0x1330   :  { %v1105_v2 = vadd.f32 %v1100_v1, %v1085_v60 }
0x1331   :  { %1756 = vtanh.f32 %v1106_v62 }
0x1332   :  { %1758 = vtanh.f32 %v1105_v2 }
0x133b   :  { %v1757_v3 = vpop.eup %1756 }
0x133c   :  { %v1759_v4 = vpop.eup %1758  ;;  %1113 = vrot.lane.b32.xlu1 %v1757_v3, %s1796_s17 }
0x133d   :  { %1111 = vrot.lane.b32.xlu0 %v1759_v4, %s1796_s17 }
0x13ae   :  { %v1114_v5 = vpop.permute.xlu1 %1113 }
0x13af   :  { %v2034_v6 = vmul.f32 %v1753_v49, %v1114_v5  ;;  %v1112_v7 = vpop.permute.xlu0 %1111 }
0x13b0   :  { %v2036_v8 = vmul.f32 %v1755_v53, %v1112_v7 }
0x13b1   :  { %1123 = vrot.lane.b32.xlu1 %v2034_v6, %s1807_s28 }
0x13b2   :  { %1121 = vrot.lane.b32.xlu0 %v2036_v8, %s1807_s28 }
0x1423   :  { %v1124_v12 = vpop.permute.xlu1 %1123 }
0x1424   :  { %v1122_v10 = vpop.permute.xlu0 %1121 }
0x1425   :  { %1619 = vmatprep.mubr.msk.f32.mxu1 %vm231_vm7, %v1122_v10 }
0x1426   :  { %1620 = vmatmul.mubr.msk.f32.vlgmr.msra.gmra.mrb[6].mxu1 %vm231_vm7, %v1124_v12 }
0x14f9   :  { %v1621_v13 = vpop.f32.mrb[6].mxu1 }
0x14fa   :  { %1208 = vrot.lane.b32.xlu1 %v1621_v13, %s1808_s29  ;;  %v1195_v14 = vpop.f32.mrb[7].mxu1 }
0x14fb   :  { %1206 = vrot.lane.b32.xlu0 %v1195_v14, %s1808_s29 }
0x156c   :  { %v1209_v15 = vpop.permute.xlu1 %1208 }
0x156d   :  { %v1213_v16 = vadd.f32 %v1209_v15, %v1908_v32  ;;  %v1207_v17 = vpop.permute.xlu0 %1206 }
0x156e   :  { %v1212_v18 = vadd.f32 %v1207_v17, %v1910_v34 }
0x156f   :  { %1760 = vtanh.f32 %v1213_v16  ;;  %v1529_v22 = vmul.f32 -1.442695, %v1213_v16 }
0x1570   :  { %1762 = vtanh.f32 %v1212_v18  ;;  %v1528_v23 = vmul.f32 -1.442695, %v1212_v18 }
0x1571   :  { %1764 = vpow2.f32 %v1529_v22 }
0x1572   :  { %1766 = vpow2.f32 %v1528_v23 }
0x1579   :  { %v1761_v19 = vpop.eup %1760 }
0x157a   :  { %v1763_v21 = vpop.eup %1762  ;;  %1242 = vrot.lane.b32.xlu1 %v1761_v19, %s1794_s4 }
0x157b   :  { %1240 = vrot.lane.b32.xlu0 %v1763_v21, %s1794_s4  ;;  %v1765_v24 = vpop.eup %1764 }
0x157c   :  { %v1767_v25 = vpop.eup %1766  ;;  %v1221_v26 = vadd.f32 1.0, %v1765_v24 }
0x157d   :  { %v1220_v28 = vadd.f32 1.0, %v1767_v25 }
0x157e   :  { %1232 = vrot.lane.b32.xlu1 %v1106_v62, %s1798_s19  ;;  %1768 = vrcp.f32 %v1221_v26 }
0x157f   :  { %1230 = vrot.lane.b32.xlu0 %v1105_v2, %s1798_s19  ;;  %1770 = vrcp.f32 %v1220_v28 }
0x1588   :  { %v1769_v30 = vpop.eup %1768 }
0x1589   :  { %v1771_v33 = vpop.eup %1770 }
0x15ec   :  { %v1243_v31 = vpop.permute.xlu1 %1242 }
0x15ed   :  { %v1247_v36 = vmul.f32 %v1769_v30, %v1243_v31  ;;  %v1241_v38 = vpop.permute.xlu0 %1240 }
0x15ee   :  { %v1246_v39 = vmul.f32 %v1771_v33, %v1241_v38 }
0x15ef   :  { %1252 = vrot.lane.b32.xlu1 %v1247_v36, %s1795_s5 }
0x15f0   :  { %1250 = vrot.lane.b32.xlu0 %v1246_v39, %s1795_s5  ;;  %v1233_v40 = vpop.permute.xlu1 %1232 }
0x15f1   :  { %v1231_v41 = vpop.permute.xlu0 %1230  ;;  %v1237_v42 = vmul.f32 %v1769_v30, %v1233_v40 }
0x15f2   :  { %v1236_v43 = vmul.f32 %v1771_v33, %v1231_v41 }
0x1661   :  { %v1253_v20 = vpop.permute.xlu1 %1252 }
0x1662   :  { %v1257_v44 = vadd.f32 %v1253_v20, %v1237_v42  ;;  %v1251_v45 = vpop.permute.xlu0 %1250 }
0x1663   :  { %v1256_v46 = vadd.f32 %v1251_v45, %v1236_v43 }
0x1664   :  { %1772 = vtanh.f32 %v1257_v44 }
0x1665   :  { %1774 = vtanh.f32 %v1256_v46 }
0x166e   :  { %v1773_v47 = vpop.eup %1772 }
0x166f   :  { %v1775_v48 = vpop.eup %1774  ;;  %1264 = vrot.lane.b32.xlu1 %v1773_v47, %s1796_s17 }
0x1670   :  { %1262 = vrot.lane.b32.xlu0 %v1775_v48, %s1796_s17 }
0x16e1   :  { %v1265_v49 = vpop.permute.xlu1 %1264 }
0x16e2   :  { %v2052_v51 = vmul.f32 %v1769_v30, %v1265_v49  ;;  %v1263_v53 = vpop.permute.xlu0 %1262 }
0x16e3   :  { %v2054_v54 = vmul.f32 %v1771_v33, %v1263_v53 }
0x16e4   :  { %1274 = vrot.lane.b32.xlu1 %v2052_v51, %s1809_s30 }
0x16e5   :  { %1272 = vrot.lane.b32.xlu0 %v2054_v54, %s1809_s30 }
0x1756   :  { %v1275_v56 = vpop.permute.xlu1 %1274 }
0x1757   :  { %v1273_v55 = vpop.permute.xlu0 %1272 }
0x1758   :  { %1624 = vmatprep.mubr.msk.f32.mxu0 %vm231_vm7, %v1273_v55 }
0x1759   :  { %1625 = vmatmul.mubr.msk.f32.vlgmr.msra.gmra.mrb[10].mxu0 %vm231_vm7, %v1275_v56 }
0x182c   :  { %v1626_v57 = vpop.f32.mrb[10].mxu0 }
0x182d   :  { %1359 = vrot.lane.b32.xlu1 %v1626_v57, %s1810_s2  ;;  %v1346_v58 = vpop.f32.mrb[11].mxu0 }
0x182e   :  { %1357 = vrot.lane.b32.xlu0 %v1346_v58, %s1810_s2 }
0x189f   :  { %v1360_v59 = vpop.permute.xlu1 %1359 }
0x18a0   :  { %v1364_v60 = vadd.f32 %v1360_v59, %v1908_v32  ;;  %v1358_v61 = vpop.permute.xlu0 %1357 }
0x18a1   :  { %v1363_v62 = vadd.f32 %v1358_v61, %v1910_v34 }
0x18a2   :  { %1776 = vtanh.f32 %v1364_v60  ;;  %v1534_v3 = vmul.f32 -1.442695, %v1364_v60 }
0x18a3   :  { %1778 = vtanh.f32 %v1363_v62  ;;  %v1533_v4 = vmul.f32 -1.442695, %v1363_v62 }
0x18a4   :  { %1780 = vpow2.f32 %v1534_v3 }
0x18a5   :  { %1782 = vpow2.f32 %v1533_v4 }
0x18ac   :  { %v1777_v1 = vpop.eup %1776 }
0x18ad   :  { %v1779_v2 = vpop.eup %1778  ;;  %1393 = vrot.lane.b32.xlu1 %v1777_v1, %s1794_s4 }
0x18ae   :  { %1391 = vrot.lane.b32.xlu0 %v1779_v2, %s1794_s4  ;;  %v1781_v32 = vpop.eup %1780 }
0x18af   :  { %v1783_v5 = vpop.eup %1782  ;;  %v1372_v7 = vadd.f32 1.0, %v1781_v32 }
0x18b0   :  { %v1371_v34 = vadd.f32 1.0, %v1783_v5 }
0x18b1   :  { %1383 = vrot.lane.b32.xlu1 %v1257_v44, %s1798_s19  ;;  %1784 = vrcp.f32 %v1372_v7 }
0x18b2   :  { %1381 = vrot.lane.b32.xlu0 %v1256_v46, %s1798_s19  ;;  %1786 = vrcp.f32 %v1371_v34 }
0x18bb   :  { %v1785_v10 = vpop.eup %1784 }
0x18bc   :  { %v1787_v13 = vpop.eup %1786 }
0x191f   :  { %v1394_v12 = vpop.permute.xlu1 %1393 }
0x1920   :  { %v1398_v14 = vmul.f32 %v1785_v10, %v1394_v12  ;;  %v1392_v15 = vpop.permute.xlu0 %1391 }
0x1921   :  { %v1397_v16 = vmul.f32 %v1787_v13, %v1392_v15 }
0x1922   :  { %1403 = vrot.lane.b32.xlu1 %v1398_v14, %s1795_s5 }
0x1923   :  { %1401 = vrot.lane.b32.xlu0 %v1397_v16, %s1795_s5  ;;  %v1384_v17 = vpop.permute.xlu1 %1383 }
0x1924   :  { %v1382_v18 = vpop.permute.xlu0 %1381  ;;  %v1388_v19 = vmul.f32 %v1785_v10, %v1384_v17 }
0x1925   :  { %v1387_v21 = vmul.f32 %v1787_v13, %v1382_v18 }
0x1994   :  { %v1404_v22 = vpop.permute.xlu1 %1403 }
0x1995   :  { %v1408_v23 = vadd.f32 %v1404_v22, %v1388_v19  ;;  %v1402_v24 = vpop.permute.xlu0 %1401 }
0x1996   :  { %v1407_v25 = vadd.f32 %v1402_v24, %v1387_v21 }
0x1997   :  { %1788 = vtanh.f32 %v1408_v23 }
0x1998   :  { %1790 = vtanh.f32 %v1407_v25 }
0x19a1   :  { %v1789_v26 = vpop.eup %1788 }
0x19a2   :  { %v1791_v28 = vpop.eup %1790  ;;  %1415 = vrot.lane.b32.xlu1 %v1789_v26, %s1796_s17 }
0x19a3   :  { %1413 = vrot.lane.b32.xlu0 %v1791_v28, %s1796_s17 }
0x19a6   :  { %1425 = vrot.lane.b32.xlu1 %v1944_v35, %s1811_s7 }
0x19a7   :  { %1423 = vrot.lane.b32.xlu0 %v1946_v37, %s1811_s7 }
0x19aa   :  { %1431 = vrot.lane.b32.xlu1 %v1968_v9, %s1812_s8 }
0x19ab   :  { %1429 = vrot.lane.b32.xlu0 %v1970_v11, %s1812_s8 }
0x19ae   :  { %1437 = vrot.lane.b32.xlu1 %v1990_v50, %s1806_s27 }
0x19af   :  { %1435 = vrot.lane.b32.xlu0 %v1992_v52, %s1806_s27 }
0x19b2   :  { %1443 = vrot.lane.b32.xlu1 %v2012_v27, %s1803_s24 }
0x19b3   :  { %1441 = vrot.lane.b32.xlu0 %v2014_v29, %s1803_s24 }
0x19b6   :  { %1449 = vrot.lane.b32.xlu1 %v2034_v6, %s1813_s9 }
0x19b7   :  { %1447 = vrot.lane.b32.xlu0 %v2036_v8, %s1813_s9 }
0x19ba   :  { %1455 = vrot.lane.b32.xlu1 %v2052_v51, %s1814_s10 }
0x19bb   :  { %1453 = vrot.lane.b32.xlu0 %v2054_v54, %s1814_s10 }
0x1a14   :  { %v1416_v35 = vpop.permute.xlu1 %1415 }
0x1a15   :  { %v1420_v37 = vmul.f32 %v1785_v10, %v1416_v35  ;;  %v1414_v9 = vpop.permute.xlu0 %1413 }
0x1a16   :  { %v1419_v11 = vmul.f32 %v1787_v13, %v1414_v9 }
0x1a17   :  { %1463 = vrot.lane.b32.xlu1 %v1420_v37, %s1800_s21 }
0x1a18   :  { %1461 = vrot.lane.b32.xlu0 %v1419_v11, %s1800_s21  ;;  %v1426_v50 = vpop.permute.xlu1 %1425 }
0x1a19   :  { %v1424_v52 = vpop.permute.xlu0 %1423  ;;  %v1468_v38 = vsel %vm231_vm7, %v1922_v0, %v1426_v50 }
0x1a1a   :  { %v1467_v39 = vsel %vm231_vm7, %v1920_v63, %v1424_v52 }
0x1a1c   :  { %v1432_v27 = vpop.permute.xlu1 %1431 }
0x1a1d   :  { %v1430_v29 = vpop.permute.xlu0 %1429  ;;  %v1471_v40 = vsel %vm1469_vm8, %v1468_v38, %v1432_v27 }
0x1a1e   :  { %v1470_v42 = vsel %vm1469_vm8, %v1467_v39, %v1430_v29 }
0x1a20   :  { %v1438_v6 = vpop.permute.xlu1 %1437 }
0x1a21   :  { %v1436_v30 = vpop.permute.xlu0 %1435  ;;  %v1474_v43 = vsel %vm1472_vm9, %v1471_v40, %v1438_v6 }
0x1a22   :  { %v1473_v44 = vsel %vm1472_vm9, %v1470_v42, %v1436_v30 }
0x1a24   :  { %v1444_v8 = vpop.permute.xlu1 %1443 }
0x1a25   :  { %v1442_v31 = vpop.permute.xlu0 %1441  ;;  %v1476_v45 = vsel %vm41_vm0, %v1474_v43, %v1444_v8 }
0x1a26   :  { %v1475_v46 = vsel %vm41_vm0, %v1473_v44, %v1442_v31 }
0x1a28   :  { %v1450_v33 = vpop.permute.xlu1 %1449 }
0x1a29   :  { %v1448_v36 = vpop.permute.xlu0 %1447  ;;  %v1479_v47 = vsel %vm1477_vm10, %v1476_v45, %v1450_v33 }
0x1a2a   :  { %v1478_v48 = vsel %vm1477_vm10, %v1475_v46, %v1448_v36 }
0x1a2c   :  { %v1456_v41 = vpop.permute.xlu1 %1455 }
0x1a2d   :  { %v1454_v20 = vpop.permute.xlu0 %1453  ;;  %v1482_v49 = vsel %vm1480_vm11, %v1479_v47, %v1456_v41 }
0x1a2e   :  { %v1481_v51 = vsel %vm1480_vm11, %v1478_v48, %v1454_v20 }
0x1a89   :  { %v1464_v0 = vpop.permute.xlu1 %1463 }
0x1a8a   :  { %v1485_v53 = vsel %vm1483_vm12, %v1482_v49, %v1464_v0  ;;  %v1462_v63 = vpop.permute.xlu0 %1461 }
0x1a8b   :  { %1487 = vst.msk [vmem:[%s2108_s6 + $0x8] sm:$0xff] %vm148_vm4, %v1485_v53  ;;  %v1484_v54 = vsel %vm1483_vm12, %v1481_v51, %v1462_v63 }
0x1a8c   :  { %1486 = vst.msk [vmem:[%s2108_s6] sm:$0xff] %vm148_vm4, %v1484_v54 }

</bundles_post_ra>
